<compile_context>
chip_gen: v5e
topology: v5e:2x2
jax: 0.10.0
libtpu: 0.0.40
codegen_flags: <defaults>
</compile_context>

<pallas_src>
import jax
import jax.numpy as jnp
from jax.experimental import pallas as pl
from jax.experimental.pallas import tpu as pltpu


def _patch_embed_kernel(patches_ref, w_ref, pos_ref, o_ref):
    # patches_ref: (bb, S_pad, Pp)  flattened patches; row 0 per image = zero cls slot
    # w_ref:       (Pp, Dp)         conv weight as a projection matrix (lane-padded)
    # pos_ref:     (S_pad, Dp)      pos_embed with conv bias / class token folded in (f32)
    # o_ref:       (bb, S_pad, Dp)  output block
    bb, s_pad, p_pad = patches_ref.shape
    d_pad = w_ref.shape[1]
    # Merge the image and sequence axes (both sublane-tile aligned) into one
    # M axis so the whole block is a single MXU GEMM.
    lhs = patches_ref[...].reshape(bb * s_pad, p_pad)
    proj = jnp.dot(lhs, w_ref[...], preferred_element_type=jnp.float32)
    proj = proj.reshape(bb, s_pad, d_pad) + pos_ref[...][None, :, :]
    o_ref[...] = proj.astype(o_ref.dtype)


def _round_up(x, m):
    return (x + m - 1) // m * m


def _pick_images_per_block(B, s_pad, p_pad, d_pad, lhs_bytes, out_bytes,
                           target_rows=512, vmem_budget=20 * (1 << 20)):
    """Images per grid step.  Preference order:
       1) per-step VMEM footprint (double-buffered patch/out blocks + the two
          constant-index operands, conservatively counted at 2 buffers each)
          fits `vmem_budget` (safe under v7x's 64 MiB and v5e's small default),
       2) >= 4 grid steps (>= 2 per TensorCore on v7x's megacore),
       3) >= 2 grid steps (pipeline steady state on single-TC v5e/v6e),
       4) block rows near `target_rows` to amortize ~0.35 us per-step overhead."""
    fixed = 2 * (p_pad * d_pad * lhs_bytes + s_pad * d_pad * 4)

    def footprint(bb):
        return 2 * bb * s_pad * (p_pad * lhs_bytes + d_pad * out_bytes) + fixed

    candidates = [bb for bb in range(1, B + 1) if B % bb == 0]

    def score(bb):
        steps = B // bb
        rows = bb * s_pad
        return (footprint(bb) <= vmem_budget, steps >= 4, steps >= 2,
                -abs(rows - target_rows))

    bb = max(candidates, key=score)
    if footprint(bb) > vmem_budget:
        bb = 1  # smallest possible block; vmem_limit_bytes stretches as needed
    return bb, footprint(bb)


def patch_embedding(x, conv_w, conv_b, class_token, pos_embed, *, patch_size,
                    compute_dtype=jnp.bfloat16, out_dtype=None):
    """x: (B, C, H, W) NCHW, conv_w: (D, C, p, p), conv_b: (D,),
    class_token: (1, 1, D), pos_embed: (1, N+1, D)."""
    B, C, H, W = x.shape
    p = patch_size
    assert H % p == 0 and W % p == 0, "H/W must be divisible by patch_size"
    nh, nw = H // p, W // p
    N = nh * nw
    D = conv_w.shape[0]
    P = C * p * p
    S = N + 1                              # sequence length incl. class token
    # Lane-pad the contraction (P) and feature (D) dims to multiples of 128 and
    # sublane-pad the per-image sequence to a multiple of 16 (bf16 packs two
    # rows per sublane) so blocks are dense and M-tiling is independent of S.
    Pp = _round_up(P, 128)
    Dp = _round_up(D, 128)
    S_pad = _round_up(S, 16)
    if out_dtype is None:
        out_dtype = x.dtype

    # --- glue: patch extraction -> (B, S_pad, Pp); row 0 = zero cls slot -----
    # Feature ordering (c, ph, pw) matches conv_w.reshape(D, C*p*p).
    # TODO(synk): a fully in-kernel patch extraction (strided DMA from the NCHW
    # input + VMEM rearrange) would remove the reliance on allow_input_fusion
    # to keep this producer out of HBM.
    patches = (x.reshape(B, C, nh, p, nw, p)
                 .transpose(0, 2, 4, 1, 3, 5)
                 .reshape(B, N, P))
    patches = jnp.pad(patches, ((0, 0), (1, S_pad - S), (0, Pp - P)))
    patches = patches.astype(compute_dtype)                      # (B, S_pad, Pp)

    # --- fold conv bias + class token into the positional table (host side) ---
    pos = pos_embed.reshape(S, D).astype(jnp.float32)
    fused = jnp.concatenate(
        [pos[0:1] + class_token.reshape(1, D).astype(jnp.float32),
         pos[1:] + conv_b[None, :].astype(jnp.float32)], axis=0)   # (S, D)
    fused = jnp.pad(fused, ((0, S_pad - S), (0, Dp - D)))          # (S_pad, Dp)

    w_mat = conv_w.reshape(D, P).T.astype(compute_dtype)           # (P, D)
    w_mat = jnp.pad(w_mat, ((0, Pp - P), (0, Dp - D)))             # (Pp, Dp)

    bb, footprint = _pick_images_per_block(
        B, S_pad, Pp, Dp,
        lhs_bytes=jnp.dtype(compute_dtype).itemsize,
        out_bytes=jnp.dtype(out_dtype).itemsize)
    vmem_limit = int(min(64 * (1 << 20), max(32 * (1 << 20), 2 * footprint)))

    cost = pl.CostEstimate(
        flops=2 * B * S_pad * Pp * Dp,
        transcendentals=0,
        bytes_accessed=(patches.size * patches.dtype.itemsize
                        + w_mat.size * w_mat.dtype.itemsize
                        + fused.size * 4
                        + B * S_pad * Dp * jnp.dtype(out_dtype).itemsize),
    )

    out3d = pl.pallas_call(
        _patch_embed_kernel,
        out_shape=jax.ShapeDtypeStruct((B, S_pad, Dp), out_dtype),
        grid_spec=pltpu.PrefetchScalarGridSpec(
            num_scalar_prefetch=0,
            grid=(B // bb,),
            in_specs=[
                pl.BlockSpec((bb, S_pad, Pp), lambda i: (i, 0, 0)),
                # Constant-index operands: fetched once and kept resident.
                # Their (possible) 2x buffering is already counted in the VMEM
                # budget above.
                pl.BlockSpec((Pp, Dp), lambda i: (0, 0)),
                pl.BlockSpec((S_pad, Dp), lambda i: (0, 0)),
            ],
            out_specs=pl.BlockSpec((bb, S_pad, Dp), lambda i: (i, 0, 0)),
        ),
        compiler_params=pltpu.CompilerParams(
            dimension_semantics=("parallel",),
            vmem_limit_bytes=vmem_limit,
            # Fuse the patch-extraction reshape/transpose/pad/cast producer
            # into the pallas input read instead of materializing it in HBM.
            allow_input_fusion=[True, False, False],
        ),
        cost_estimate=cost,
    )(patches, w_mat, fused)

    # TODO(synk): nn.Dropout(0.1) is identity in eval mode; training-mode
    # stochastic dropout is not implemented here.
    return out3d[:, :S, :D]


def _reference(x, conv_w, conv_b, class_token, pos_embed, patch_size):
    """Plain-JAX conv-as-matmul reference (f32, highest precision)."""
    B, C, H, W = x.shape
    p = patch_size
    nh, nw = H // p, W // p
    N = nh * nw
    D = conv_w.shape[0]
    patches = (x.reshape(B, C, nh, p, nw, p)
                 .transpose(0, 2, 4, 1, 3, 5)
                 .reshape(B, N, C * p * p))
    proj = jnp.einsum('bnp,dp->bnd', patches, conv_w.reshape(D, -1),
                      precision=jax.lax.Precision.HIGHEST) + conv_b
    seq = jnp.concatenate(
        [jnp.broadcast_to(class_token, (B, 1, D)), proj], axis=1)
    return seq + pos_embed


if __name__ == "__main__":
    key = jax.random.PRNGKey(0)
    pe = jax.jit(patch_embedding,
                 static_argnames=("patch_size", "compute_dtype", "out_dtype"))

    # --- Case 1: small module-consistent shapes (exercises P, D, S padding).
    img, psize, C, D, B = 16, 4, 4, 32, 2
    N = (img // psize) ** 2
    kx, kw, kb, kc, kp, key = jax.random.split(key, 6)
    x = jax.random.normal(kx, (B, C, img, img), jnp.float32)
    conv_w = 0.05 * jax.random.normal(kw, (D, C, psize, psize), jnp.float32)
    conv_b = 0.05 * jax.random.normal(kb, (D,), jnp.float32)
    class_token = 0.02 * jax.random.normal(kc, (1, 1, D), jnp.float32)
    pos_embed = 0.02 * jax.random.normal(kp, (1, N + 1, D), jnp.float32)

    out = jax.block_until_ready(
        pe(x, conv_w, conv_b, class_token, pos_embed, patch_size=psize))
    ref = _reference(x, conv_w, conv_b, class_token, pos_embed, psize)
    assert out.shape == (B, N + 1, D)
    assert jnp.allclose(out, ref, atol=3e-2, rtol=3e-2)      # bf16 inputs, f32 accum

    # f32 compute path for tighter parity with the PyTorch module.
    out_f32 = jax.block_until_ready(
        pe(x, conv_w, conv_b, class_token, pos_embed, patch_size=psize,
           compute_dtype=jnp.float32))
    assert jnp.allclose(out_f32, ref, atol=2e-3, rtol=2e-3)

    # --- Case 2: larger batch -> multi-step, sublane-aligned M tiling (grid=4).
    img, psize, C, D, B = 32, 8, 3, 256, 16
    N = (img // psize) ** 2
    kx, kw, kb, kc, kp, key = jax.random.split(key, 6)
    x2 = jax.random.normal(kx, (B, C, img, img), jnp.float32)
    conv_w2 = 0.05 * jax.random.normal(kw, (D, C, psize, psize), jnp.float32)
    conv_b2 = 0.05 * jax.random.normal(kb, (D,), jnp.float32)
    class_token2 = 0.02 * jax.random.normal(kc, (1, 1, D), jnp.float32)
    pos_embed2 = 0.02 * jax.random.normal(kp, (1, N + 1, D), jnp.float32)

    out2 = jax.block_until_ready(
        pe(x2, conv_w2, conv_b2, class_token2, pos_embed2, patch_size=psize))
    ref2 = _reference(x2, conv_w2, conv_b2, class_token2, pos_embed2, psize)
    assert out2.shape == (B, N + 1, D)
    assert jnp.allclose(out2, ref2, atol=3e-2, rtol=3e-2)

    # bf16 output path (halves store traffic when the model runs bf16).
    out2_bf16 = jax.block_until_ready(
        pe(x2, conv_w2, conv_b2, class_token2, pos_embed2, patch_size=psize,
           out_dtype=jnp.bfloat16))
    assert out2_bf16.dtype == jnp.bfloat16
    assert jnp.allclose(out2_bf16.astype(jnp.float32), ref2, atol=5e-2, rtol=5e-2)

    print("KERNEL_OK")
</pallas_src>

<mosaic_0001>
module attributes {stable_mosaic.version = 11 : i64} {
  func.func @_patch_embed_kernel(%arg0: i32, %arg1: memref<1x32x128xbf16, #tpu.memory_space<vmem>>, %arg2: memref<128x128xbf16, #tpu.memory_space<vmem>>, %arg3: memref<32x128xf32, #tpu.memory_space<vmem>>, %arg4: memref<1x32x128xf32, #tpu.memory_space<vmem>>) attributes {dimension_semantics = [#tpu.dimension_semantics<parallel>], iteration_bounds = array<i64: 2>, scalar_prefetch = 0 : i64, scratch_operands = 0 : i64, tpu.core_type = #tpu.core_type<tc>, window_params = [{transform_indices = @transform_0, window_bounds = array<i64: 1, 32, 128>}, {pipeline_mode = #tpu.pipeline_mode<synchronous>, transform_indices = @transform_1, window_bounds = array<i64: 128, 128>}, {pipeline_mode = #tpu.pipeline_mode<synchronous>, transform_indices = @transform_2, window_bounds = array<i64: 32, 128>}, {transform_indices = @transform_3, window_bounds = array<i64: 1, 32, 128>}]} {
    %c0 = arith.constant 0 : index
    %c0_0 = arith.constant 0 : index
    %c0_1 = arith.constant 0 : index
    %0 = vector.load %arg1[%c0, %c0_0, %c0_1] : memref<1x32x128xbf16, #tpu.memory_space<vmem>>, vector<1x32x128xbf16>
    %1 = vector.shape_cast %0 : vector<1x32x128xbf16> to vector<32x128xbf16>
    %c0_2 = arith.constant 0 : index
    %c0_3 = arith.constant 0 : index
    %2 = vector.load %arg2[%c0_2, %c0_3] : memref<128x128xbf16, #tpu.memory_space<vmem>>, vector<128x128xbf16>
    %cst = arith.constant dense<0.000000e+00> : vector<32x128xf32>
    %3 = tpu.matmul %1, %2, %cst {dimension_numbers = #tpu.dot_dimension_numbers<[1], [0], [0], [1], [0, 0, 1, 1], [], []>} : vector<32x128xbf16>, vector<128x128xbf16>, vector<32x128xf32> -> vector<32x128xf32>
    %4 = vector.shape_cast %3 : vector<32x128xf32> to vector<1x32x128xf32>
    %c0_4 = arith.constant 0 : index
    %c0_5 = arith.constant 0 : index
    %5 = vector.load %arg3[%c0_4, %c0_5] : memref<32x128xf32, #tpu.memory_space<vmem>>, vector<32x128xf32>
    %6 = vector.shape_cast %5 : vector<32x128xf32> to vector<1x32x128xf32>
    %7 = arith.addf %4, %6 : vector<1x32x128xf32>
    %c0_6 = arith.constant 0 : index
    %c0_7 = arith.constant 0 : index
    %c0_8 = arith.constant 0 : index
    %8 = vector.load %arg4[%c0_6, %c0_7, %c0_8] : memref<1x32x128xf32, #tpu.memory_space<vmem>>, vector<1x32x128xf32>
    tpu.vector_store %arg4[%c0_6, %c0_7, %c0_8], %7 {strides = array<i32>} : memref<1x32x128xf32, #tpu.memory_space<vmem>>, vector<1x32x128xf32>,
    return
  }
  func.func @transform_0(%arg0: i32) -> (i32, i32, i32) {
    %c0_i32 = arith.constant 0 : i32
    %c0_i32_0 = arith.constant 0 : i32
    %c0_i32_1 = arith.constant 0 : i32
    return %arg0, %c0_i32, %c0_i32_0 : i32, i32, i32
  }
  func.func @transform_1(%arg0: i32) -> (i32, i32) {
    %c0_i32 = arith.constant 0 : i32
    %c0_i32_0 = arith.constant 0 : i32
    %c0_i32_1 = arith.constant 0 : i32
    return %c0_i32, %c0_i32_0 : i32, i32
  }
  func.func @transform_2(%arg0: i32) -> (i32, i32) {
    %c0_i32 = arith.constant 0 : i32
    %c0_i32_0 = arith.constant 0 : i32
    %c0_i32_1 = arith.constant 0 : i32
    return %c0_i32, %c0_i32_0 : i32, i32
  }
  func.func @transform_3(%arg0: i32) -> (i32, i32, i32) {
    %c0_i32 = arith.constant 0 : i32
    %c0_i32_0 = arith.constant 0 : i32
    %c0_i32_1 = arith.constant 0 : i32
    return %arg0, %c0_i32, %c0_i32_0 : i32, i32, i32
  }
}

</mosaic_0001>

<bundles_post_ra>
// kernel: patch_embedding.2
= control target key start
LH: loop header
LB: loop body
LE: loop exit
PB: predicated region body
PF: predicated region fallthrough
CT: control target
= control target key end

     0   :  { %s553_s17 = smov 0   ;;  %s615_s0 = inlined_call_operand.vmem [shape: bf16[128,128], index: 0, kind: input, shape index: {}]   ;;  %s616_s1 = inlined_call_operand.vmem [shape: f32[32,128], index: 1, kind: input, shape index: {}]   ;;  %s617_s2 = inlined_call_operand.vmem [shape: bf16[2,16,64], index: 2, kind: input, shape index: {}]   ;;  %s618_s3 = inlined_call_operand.<no memory space> [shape: bf16[], index: 3, kind: input, shape index: {}]   ;;  %s619_s4 = inlined_call_operand.vmem [shape: f32[2,32,128], index: 4, kind: output, shape index: {}]  }
   0x1   :  { %v9_v0 = vstv %s618_s3 }
   0x2   :  { %v551_v1 = vunpack.i.l.bf16 %v9_v0 }
   0x3 LB: > { %s428_s18 = sadd.s32 4294967295, %s521_s17   ;;  %p432_p0 = scmp.ge.s32.totalorder %s521_s17, 1  ;;  %s521_s17 = sphi %s553_s17, %s19_s17  }
   0x4   : > { %p144_p1 = scmp.lt.s32.totalorder %s521_s17, 3 }
   0x6   : > { %p145_p2 = pnand %p432_p0, %p144_p1 }
   0x8   : > { %148 = sbr.rel (%p145_p2) target bundleno = 183 (0xb7), region = 32 }
   0xd   : > { %v493_v2 = vld [vmem:[%s615_s0 + $0x38] sm:$0xff]  ;;  %p169_p3 = scmp.lt.s32.totalorder %s428_s18, 1  ;;  %v204_v3 = vlaneseq  ;;  %v492_v4 = vld [vmem:[%s615_s0 + $0x30] sm:$0xff]  ;;  %v491_v6 = vld [vmem:[%s615_s0 + $0x28] sm:$0xff]  ;;  %vm209_vm1 = vcmask 1046528  }
   0xe   : > { %335 = vmatpush.bf16.msra.mxu0 %v493_v2  ;;  %499 = vmatpush.bf16.msra.mxu1 %v493_v2  ;;  %v490_v12 = vld [vmem:[%s615_s0 + $0x20] sm:$0xff]  ;;  %v489_v22 = vld [vmem:[%s615_s0 + $0x18] sm:$0xff]  ;;  %v488_v23 = vld [vmem:[%s615_s0 + $0x10] sm:$0xff] }
   0xf   : > { %s621_s18 = smov (!%p169_p3, %s428_s18), 1  ;;  %v205_v5 = vand.u32 127, %v204_v3  ;;  %v487_v24 = vld [vmem:[%s615_s0 + $0x8] sm:$0xff]  ;;  %v486_v25 = vld [vmem:[%s615_s0] sm:$0xff]  ;;  %v356_v29 = vld [vmem:[%s616_s1 + $0x10] sm:$0xff] }
  0x10   : > { %s482_s22 = sshll.u32 %s621_s18, 3  ;;  %s483_s12 = sshll.u32 %s621_s18, 5  ;;  %v354_v28 = vld [vmem:[%s616_s1] sm:$0xff]  ;;  %v355_v34 = vld [vmem:[%s616_s1 + $0x8] sm:$0xff]  ;;  %v357_v35 = vld [vmem:[%s616_s1 + $0x18] sm:$0xff] }
  0x11   : > { %s399_s25 = scalar_lea.vmem %s617_s2, %s482_s22  ;;  %vm207_vm0 = vcmp.lt.s32.totalorder %v205_v5, 64  ;;  %s179_s3 = scalar_lea.vmem %s619_s4, %s483_s12 }
  0x12   : > { %336 = vmatpush.bf16.msra.mxu0 %v492_v4  ;;  %500 = vmatpush.bf16.msra.mxu1 %v492_v4  ;;  %v438_v7 = vld [vmem:[%s399_s25] sm:$0xff]  }
  0x13   : > { %v202_v8 = vunpack.c.l.bf16 %v438_v7  ;;  %v227_v9 = vunpack.c.h.bf16 %v438_v7 }
  0x15   : > { %v208_v10 = vsel %vm207_vm0, %v202_v8, %v551_v1  ;;  %v233_v11 = vsel %vm207_vm0, %v227_v9, %v551_v1 }
  0x16   : > { %337 = vmatpush.bf16.msra.mxu0 %v491_v6  ;;  %501 = vmatpush.bf16.msra.mxu1 %v491_v6  ;;  %v210_v13 = vsel %vm209_vm1, %v208_v10, %v551_v1  ;;  %v235_v14 = vsel %vm209_vm1, %v233_v11, %v208_v10  ;;  %v243_v15 = vsel %vm209_vm1, %v551_v1, %v233_v11 }
  0x17   : > { %v211_v16 = vrot.slane %v210_v13, 7  ;;  %v236_v17 = vrot.slane %v235_v14, 7  ;;  %v244_v18 = vrot.slane %v243_v15, 7 }
  0x19   : > { %v212_v19 = vpack.c.bf16 0.0, %v211_v16  ;;  %v238_v20 = vpack.c.bf16 0.0, %v236_v17  ;;  %v497_v21 = vpack.c.bf16 %v551_v1, %v244_v18 }
  0x1a   : > { %338 = vmatpush.bf16.msra.mxu0 %v490_v12  ;;  %502 = vmatpush.bf16.msra.mxu1 %v490_v12 }
  0x1b   : > { %215 = vst [vmem:[#allocation7] sm:$0xf] %v212_v19 }
  0x1c   : > { %241 = vst [vmem:[#allocation7 + $0x4] sm:$0xf] %v238_v20 }
  0x1d   : > { %498 = vst [vmem:[#allocation7 + $0x8] sm:$0xff] %v497_v21  }
  0x1e   : > { %339 = vmatpush.bf16.msra.mxu0 %v489_v22  ;;  %503 = vmatpush.bf16.msra.mxu1 %v489_v22 }
  0x22   : > { %340 = vmatpush.bf16.msra.mxu0 %v488_v23  ;;  %504 = vmatpush.bf16.msra.mxu1 %v488_v23 }
  0x23   : > { %v484_v26 = vld [vmem:[#allocation7] sm:$0xff] }
  0x24   : > { %v485_v27 = vld [vmem:[#allocation7 + $0x8] sm:$0xff] }
  0x26   : > { %341 = vmatpush.bf16.msra.mxu0 %v487_v24  ;;  %505 = vmatpush.bf16.msra.mxu1 %v487_v24 }
  0x2a   : > { %342 = vmatpush.bf16.msra.mxu0 %v486_v25  ;;  %506 = vmatpush.bf16.msra.mxu1 %v486_v25 }
  0x2d   : > { %343 = vmatmul.bf16.vlgmr.msra.gmra.mxu0 %v484_v26  ;;  %348 = vmatmul.bf16.vlgmr.msra.gmra.mxu1 %v485_v27 }
  0xaa   : > { %v344_v30 = vpop.f32.mrf.mxu0  ;;  %v349_v31 = vpop.f32.mrf.mxu1 }
  0xab   : > { %v358_v32 = vadd.f32 %v354_v28, %v344_v30  ;;  %v360_v33 = vadd.f32 %v356_v29, %v349_v31 }
  0xad   : > { %362 = vst [vmem:[%s179_s3] sm:$0xff] %v358_v32 }
  0xae   : > { %364 = vst [vmem:[%s179_s3 + $0x10] sm:$0xff] %v360_v33 }
  0xb2   : > { %v346_v36 = vpop.f32.mrf.mxu0  ;;  %v351_v37 = vpop.f32.mrf.mxu1 }
  0xb3   : > { %v359_v38 = vadd.f32 %v355_v34, %v346_v36  ;;  %v361_v39 = vadd.f32 %v357_v35, %v351_v37 }
  0xb5   : > { %363 = vst [vmem:[%s179_s3 + $0x8] sm:$0xff] %v359_v38 }
  0xb6   : > { %365 = vst [vmem:[%s179_s3 + $0x18] sm:$0xff] %v361_v39 }
  0xb7 PF: > { %s19_s17 = sadd.s32 1, %s521_s17  }
  0xb8   : > { %p16_p4 = scmp.ge.s32.totalorder %s19_s17, 4  }
  0xba   :  { %18 = sbr.rel (!%p16_p4) target bundleno = 3 (0x3), region = 67 }

</bundles_post_ra>
